<compile_context>
chip_gen: v7x
topology: tpu7x:2x2x1
jax: 0.10.0
libtpu: 0.0.40
codegen_flags: <defaults>
</compile_context>

<pallas_src>
import jax
import jax.numpy as jnp
from jax.experimental import pallas as pl
from jax.experimental.pallas import tpu as pltpu

LANE = 128  # TPU lane width


def critic_kernel(s_ref, a_ref, w1s_ref, w1a_ref, b1_ref, w2_ref, b2_ref,
                  wq_ref, bq_ref, q_ref):
    # fc1 + ReLU, concat fused:  x @ W1 == s @ W1[:Ds] + a @ W1[Ds:]
    h1 = jnp.dot(s_ref[...], w1s_ref[...], preferred_element_type=jnp.float32)
    h1 = h1 + jnp.dot(a_ref[...], w1a_ref[...],
                      preferred_element_type=jnp.float32)
    h1 = jnp.maximum(h1 + b1_ref[...], 0.0)

    # fc2 + ReLU
    h2 = jnp.dot(h1, w2_ref[...], preferred_element_type=jnp.float32)
    h2 = jnp.maximum(h2 + b2_ref[...], 0.0)

    # q head: VPU multiply + lane (XLU) reduction instead of an N=1 MXU matmul
    q = jnp.sum(h2 * wq_ref[...], axis=-1, keepdims=True) + bq_ref[...]  # (TB, 1)

    # lane-dense store: broadcast across the 128-lane output block (unmasked
    # vst); the wrapper slices column 0.
    q_ref[...] = jnp.broadcast_to(q, q_ref.shape).astype(q_ref.dtype)


def _round_up(x, m):
    return (x + m - 1) // m * m


def critic_forward(state, action, params, *, block_b=512):
    """state: (B, state_dim), action: (B, action_dim) -> q: (B, 1)."""
    state = state.astype(jnp.float32)
    action = action.astype(jnp.float32)
    B, Ds = state.shape
    _, Da = action.shape
    H = params["w1s"].shape[1]

    # Batch tile: whole (sublane-padded) batch if small, else block_b rows.
    TB = _round_up(B, 8) if B <= block_b else block_b
    B_pad = _round_up(B, TB)
    if B_pad != B:
        pad = ((0, B_pad - B), (0, 0))
        state = jnp.pad(state, pad)
        action = jnp.pad(action, pad)

    grid = (B_pad // TB,)

    def rep(shape):  # weight/bias: replicated, stays VMEM-resident across grid
        return pl.BlockSpec(shape, lambda i, _n=len(shape): (0,) * _n)

    q_wide = pl.pallas_call(
        critic_kernel,
        out_shape=jax.ShapeDtypeStruct((B_pad, LANE), jnp.float32),
        grid=grid,
        in_specs=[
            pl.BlockSpec((TB, Ds), lambda i: (i, 0)),   # state tile
            pl.BlockSpec((TB, Da), lambda i: (i, 0)),   # action tile
            rep((Ds, H)),                               # w1 (state part)
            rep((Da, H)),                               # w1 (action part)
            rep((1, H)),                                # b1
            rep((H, H)),                                # w2
            rep((1, H)),                                # b2
            rep((1, H)),                                # wq (row vector)
            rep((1, 1)),                                # bq
        ],
        out_specs=pl.BlockSpec((TB, LANE), lambda i: (i, 0)),
        compiler_params=pltpu.CompilerParams(
            dimension_semantics=("parallel",)),         # shard batch across TCs (v7x)
    )(state, action, params["w1s"], params["w1a"], params["b1"],
      params["w2"], params["b2"], params["wq"], params["bq"])

    # un-pad the batch and take the (lane-dense) first column -> (B, 1)
    return q_wide[:B, :1]


def _init_linear(key, fan_in, fan_out):
    """PyTorch nn.Linear-style uniform init, stored as (in, out)."""
    bound = 1.0 / float(fan_in) ** 0.5
    kw, kb = jax.random.split(key)
    w = jax.random.uniform(kw, (fan_in, fan_out), jnp.float32, -bound, bound)
    b = jax.random.uniform(kb, (1, fan_out), jnp.float32, -bound, bound)
    return w, b


def init_critic_params(key, state_dim, action_dim, hidden_dim):
    k1, k2, k3 = jax.random.split(key, 3)
    w1, b1 = _init_linear(k1, state_dim + action_dim, hidden_dim)
    w2, b2 = _init_linear(k2, hidden_dim, hidden_dim)
    wq, bq = _init_linear(k3, hidden_dim, 1)
    return {
        # fc1 weight split so the concat can be fused into the kernel
        "w1s": w1[:state_dim], "w1a": w1[state_dim:], "b1": b1,
        "w2": w2, "b2": b2,
        # q head stored as a (1, H) row vector (used as multiply + lane reduce)
        "wq": wq.T, "bq": bq.reshape(1, 1),
    }


if __name__ == "__main__":
    # Small shapes consistent with the module: per-agent critic taking
    # (state, action) and emitting a scalar Q per batch row.
    batch = 8
    state_dim = 8
    action_dim = 4
    hidden_dim = 32

    key = jax.random.PRNGKey(0)
    kp, ks, ka = jax.random.split(key, 3)

    params = init_critic_params(kp, state_dim, action_dim, hidden_dim)
    state = jax.random.normal(ks, (batch, state_dim), jnp.float32)
    action = jax.random.normal(ka, (batch, action_dim), jnp.float32)

    q = critic_forward(state, action, params)
    q = jax.block_until_ready(q)

    # Pure-JAX reference check (same params, same math as the PyTorch module).
    x = jnp.concatenate([state, action], axis=-1)
    w1 = jnp.concatenate([params["w1s"], params["w1a"]], axis=0)
    h1 = jnp.maximum(x @ w1 + params["b1"], 0.0)
    h2 = jnp.maximum(h1 @ params["w2"] + params["b2"], 0.0)
    q_ref = h2 @ params["wq"].T + params["bq"]

    assert q.shape == (batch, 1)
    assert jnp.allclose(q, q_ref, atol=1e-5, rtol=1e-5)

    print("KERNEL_OK")
</pallas_src>

<mosaic_0001>
module attributes {stable_mosaic.version = 11 : i64} {
  func.func @critic_kernel(%arg0: i32, %arg1: memref<8x8xf32, #tpu.memory_space<vmem>>, %arg2: memref<8x4xf32, #tpu.memory_space<vmem>>, %arg3: memref<8x32xf32, #tpu.memory_space<vmem>>, %arg4: memref<4x32xf32, #tpu.memory_space<vmem>>, %arg5: memref<1x32xf32, #tpu.memory_space<vmem>>, %arg6: memref<32x32xf32, #tpu.memory_space<vmem>>, %arg7: memref<1x32xf32, #tpu.memory_space<vmem>>, %arg8: memref<1x32xf32, #tpu.memory_space<vmem>>, %arg9: memref<1x1xf32, #tpu.memory_space<vmem>>, %arg10: memref<8x128xf32, #tpu.memory_space<vmem>>) attributes {dimension_semantics = [#tpu.dimension_semantics<parallel>], iteration_bounds = array<i64: 1>, scalar_prefetch = 0 : i64, scratch_operands = 0 : i64, tpu.core_type = #tpu.core_type<tc>, window_params = [{transform_indices = @transform_0, window_bounds = array<i64: 8, 8>}, {transform_indices = @transform_1, window_bounds = array<i64: 8, 4>}, {pipeline_mode = #tpu.pipeline_mode<synchronous>, transform_indices = @transform_2, window_bounds = array<i64: 8, 32>}, {pipeline_mode = #tpu.pipeline_mode<synchronous>, transform_indices = @transform_3, window_bounds = array<i64: 4, 32>}, {pipeline_mode = #tpu.pipeline_mode<synchronous>, transform_indices = @transform_4, window_bounds = array<i64: 1, 32>}, {pipeline_mode = #tpu.pipeline_mode<synchronous>, transform_indices = @transform_5, window_bounds = array<i64: 32, 32>}, {pipeline_mode = #tpu.pipeline_mode<synchronous>, transform_indices = @transform_6, window_bounds = array<i64: 1, 32>}, {pipeline_mode = #tpu.pipeline_mode<synchronous>, transform_indices = @transform_7, window_bounds = array<i64: 1, 32>}, {pipeline_mode = #tpu.pipeline_mode<synchronous>, transform_indices = @transform_8, window_bounds = array<i64: 1, 1>}, {transform_indices = @transform_9, window_bounds = array<i64: 8, 128>}]} {
    %c0 = arith.constant 0 : index
    %c0_0 = arith.constant 0 : index
    %0 = vector.load %arg1[%c0, %c0_0] : memref<8x8xf32, #tpu.memory_space<vmem>>, vector<8x8xf32>
    %c0_1 = arith.constant 0 : index
    %c0_2 = arith.constant 0 : index
    %1 = vector.load %arg3[%c0_1, %c0_2] : memref<8x32xf32, #tpu.memory_space<vmem>>, vector<8x32xf32>
    %cst = arith.constant dense<0.000000e+00> : vector<8x32xf32>
    %2 = tpu.matmul %0, %1, %cst {dimension_numbers = #tpu.dot_dimension_numbers<[1], [0], [0], [1], [0, 0, 1, 1], [], []>} : vector<8x8xf32>, vector<8x32xf32>, vector<8x32xf32> -> vector<8x32xf32>
    %c0_3 = arith.constant 0 : index
    %c0_4 = arith.constant 0 : index
    %3 = vector.load %arg2[%c0_3, %c0_4] : memref<8x4xf32, #tpu.memory_space<vmem>>, vector<8x4xf32>
    %c0_5 = arith.constant 0 : index
    %c0_6 = arith.constant 0 : index
    %4 = vector.load %arg4[%c0_5, %c0_6] : memref<4x32xf32, #tpu.memory_space<vmem>>, vector<4x32xf32>
    %cst_7 = arith.constant dense<0.000000e+00> : vector<8x32xf32>
    %5 = tpu.matmul %3, %4, %cst_7 {dimension_numbers = #tpu.dot_dimension_numbers<[1], [0], [0], [1], [0, 0, 1, 1], [], []>} : vector<8x4xf32>, vector<4x32xf32>, vector<8x32xf32> -> vector<8x32xf32>
    %6 = arith.addf %2, %5 : vector<8x32xf32>
    %c0_8 = arith.constant 0 : index
    %c0_9 = arith.constant 0 : index
    %7 = vector.load %arg5[%c0_8, %c0_9] : memref<1x32xf32, #tpu.memory_space<vmem>>, vector<1x32xf32>
    %8 = vector.broadcast %7 : vector<1x32xf32> to vector<8x32xf32>
    %9 = arith.addf %6, %8 : vector<8x32xf32>
    %cst_10 = arith.constant 0.000000e+00 : f32
    %10 = vector.broadcast %cst_10 : f32 to vector<8x32xf32>
    %11 = arith.maximumf %9, %10 : vector<8x32xf32>
    %c0_11 = arith.constant 0 : index
    %c0_12 = arith.constant 0 : index
    %12 = vector.load %arg6[%c0_11, %c0_12] : memref<32x32xf32, #tpu.memory_space<vmem>>, vector<32x32xf32>
    %cst_13 = arith.constant dense<0.000000e+00> : vector<8x32xf32>
    %13 = tpu.matmul %11, %12, %cst_13 {dimension_numbers = #tpu.dot_dimension_numbers<[1], [0], [0], [1], [0, 0, 1, 1], [], []>} : vector<8x32xf32>, vector<32x32xf32>, vector<8x32xf32> -> vector<8x32xf32>
    %c0_14 = arith.constant 0 : index
    %c0_15 = arith.constant 0 : index
    %14 = vector.load %arg7[%c0_14, %c0_15] : memref<1x32xf32, #tpu.memory_space<vmem>>, vector<1x32xf32>
    %15 = vector.broadcast %14 : vector<1x32xf32> to vector<8x32xf32>
    %16 = arith.addf %13, %15 : vector<8x32xf32>
    %cst_16 = arith.constant 0.000000e+00 : f32
    %17 = vector.broadcast %cst_16 : f32 to vector<8x32xf32>
    %18 = arith.maximumf %16, %17 : vector<8x32xf32>
    %c0_17 = arith.constant 0 : index
    %c0_18 = arith.constant 0 : index
    %19 = vector.load %arg8[%c0_17, %c0_18] : memref<1x32xf32, #tpu.memory_space<vmem>>, vector<1x32xf32>
    %20 = vector.broadcast %19 : vector<1x32xf32> to vector<8x32xf32>
    %21 = arith.mulf %18, %20 : vector<8x32xf32>
    %cst_19 = arith.constant dense<0.000000e+00> : vector<8xf32>
    %22 = vector.multi_reduction <add>, %21, %cst_19 [1] : vector<8x32xf32> to vector<8xf32>
    %23 = vector.shape_cast %22 : vector<8xf32> to vector<8x1xf32>
    %c0_20 = arith.constant 0 : index
    %c0_21 = arith.constant 0 : index
    %24 = vector.load %arg9[%c0_20, %c0_21] : memref<1x1xf32, #tpu.memory_space<vmem>>, vector<1x1xf32>
    %25 = vector.broadcast %24 : vector<1x1xf32> to vector<8x1xf32>
    %26 = arith.addf %23, %25 : vector<8x1xf32>
    %27 = vector.shape_cast %26 : vector<8x1xf32> to vector<8x1xf32>
    %28 = vector.broadcast %27 : vector<8x1xf32> to vector<8x128xf32>
    %c0_22 = arith.constant 0 : index
    %c0_23 = arith.constant 0 : index
    %29 = vector.load %arg10[%c0_22, %c0_23] : memref<8x128xf32, #tpu.memory_space<vmem>>, vector<8x128xf32>
    tpu.vector_store %arg10[%c0_22, %c0_23], %28 {strides = array<i32>} : memref<8x128xf32, #tpu.memory_space<vmem>>, vector<8x128xf32>,
    return
  }
  func.func @transform_0(%arg0: i32) -> (i32, i32) {
    %c0_i32 = arith.constant 0 : i32
    %c0_i32_0 = arith.constant 0 : i32
    return %arg0, %c0_i32 : i32, i32
  }
  func.func @transform_1(%arg0: i32) -> (i32, i32) {
    %c0_i32 = arith.constant 0 : i32
    %c0_i32_0 = arith.constant 0 : i32
    return %arg0, %c0_i32 : i32, i32
  }
  func.func @transform_2(%arg0: i32) -> (i32, i32) {
    %c0_i32 = arith.constant 0 : i32
    %c0_i32_0 = arith.constant 0 : i32
    %c0_i32_1 = arith.constant 0 : i32
    return %c0_i32, %c0_i32_0 : i32, i32
  }
  func.func @transform_3(%arg0: i32) -> (i32, i32) {
    %c0_i32 = arith.constant 0 : i32
    %c0_i32_0 = arith.constant 0 : i32
    %c0_i32_1 = arith.constant 0 : i32
    return %c0_i32, %c0_i32_0 : i32, i32
  }
  func.func @transform_4(%arg0: i32) -> (i32, i32) {
    %c0_i32 = arith.constant 0 : i32
    %c0_i32_0 = arith.constant 0 : i32
    %c0_i32_1 = arith.constant 0 : i32
    return %c0_i32, %c0_i32_0 : i32, i32
  }
  func.func @transform_5(%arg0: i32) -> (i32, i32) {
    %c0_i32 = arith.constant 0 : i32
    %c0_i32_0 = arith.constant 0 : i32
    %c0_i32_1 = arith.constant 0 : i32
    return %c0_i32, %c0_i32_0 : i32, i32
  }
  func.func @transform_6(%arg0: i32) -> (i32, i32) {
    %c0_i32 = arith.constant 0 : i32
    %c0_i32_0 = arith.constant 0 : i32
    %c0_i32_1 = arith.constant 0 : i32
    return %c0_i32, %c0_i32_0 : i32, i32
  }
  func.func @transform_7(%arg0: i32) -> (i32, i32) {
    %c0_i32 = arith.constant 0 : i32
    %c0_i32_0 = arith.constant 0 : i32
    %c0_i32_1 = arith.constant 0 : i32
    return %c0_i32, %c0_i32_0 : i32, i32
  }
  func.func @transform_8(%arg0: i32) -> (i32, i32) {
    %c0_i32 = arith.constant 0 : i32
    %c0_i32_0 = arith.constant 0 : i32
    %c0_i32_1 = arith.constant 0 : i32
    return %c0_i32, %c0_i32_0 : i32, i32
  }
  func.func @transform_9(%arg0: i32) -> (i32, i32) {
    %c0_i32 = arith.constant 0 : i32
    %c0_i32_0 = arith.constant 0 : i32
    return %arg0, %c0_i32 : i32, i32
  }
}

</mosaic_0001>

<bundles_post_ra>
// kernel: tpu_custom_call.1
= control target key start
LH: loop header
LB: loop body
LE: loop exit
PB: predicated region body
PF: predicated region fallthrough
CT: control target
= control target key end

     0   :  { %s642_s0 = inlined_call_operand.hbm [shape: f32[8,8], index: 0, kind: input, shape index: {}]   ;;  %s643_s1 = inlined_call_operand.vmem [shape: f32[8,4], index: 1, kind: input, shape index: {}]   ;;  %s644_s2 = inlined_call_operand.hbm [shape: f32[8,32], index: 2, kind: input, shape index: {}]   ;;  %s645_s3 = inlined_call_operand.hbm [shape: f32[4,32], index: 3, kind: input, shape index: {}]   ;;  %s646_s4 = inlined_call_operand.vmem [shape: f32[1,32], index: 4, kind: input, shape index: {}]   ;;  %s647_s5 = inlined_call_operand.vmem [shape: f32[32,32], index: 5, kind: input, shape index: {}]   ;;  %s648_s6 = inlined_call_operand.vmem [shape: f32[1,32], index: 6, kind: input, shape index: {}]   ;;  %s649_s7 = inlined_call_operand.vmem [shape: f32[1,32], index: 7, kind: input, shape index: {}]   ;;  %s650_s8 = inlined_call_operand.<no memory space> [shape: f32[1,1], index: 8, kind: input, shape index: {}]   ;;  %s651_s9 = inlined_call_operand.hbm [shape: f32[8,128], index: 9, kind: output, shape index: {}]  }
   0x1   :  { %v14_v0 = vstv %s650_s8 }
   0x2   :  { %15 = vst [vmem:[#allocation2] sm:$0x1] %v14_v0 }
   0x3   :  { %16 = vsyncpa [#allocation4], 0 }
   0x4   :  { %17 = vsyncpa [#allocation7], 0 }
   0x5   :  { %18 = vsyncpa [#allocation5], 0  ;;  %s509_s11 = smov [#allocation6]   ;;  %s510_s13 = smov [#allocation3]  }
   0x6   :  { %s37_s12 = sshll.u32 %s509_s11, 4  ;;  %s25_s14 = sshll.u32 %s510_s13, 4  ;;  %s38_s12 = int_to_ptr.vmem [resolvable:$true] %s37_s12  ;;  %s26_s14 = int_to_ptr.vmem [resolvable:$true] %s25_s14 }
   0x7   :  { %s415_s17 = scalar_lea.hbm %s644_s2, 128 }
   0x8   :  { %p416_p0 = scmp.ne.s32.totalorder %s644_s2, %s415_s17  ;;  %p419_p1 = scmp.lt.u32.totalorder %s415_s17, %s644_s2 }
   0xa   :  { %p421_p2 = pnand %p419_p1, %p416_p0 }
   0xc   :  { %424 = shalt.err (!%p421_p2)
}
   0xd   :  { %s425_s21 = scalar_lea.vmem %s38_s12, 128  ;;  %p430_p4 = scmp.lt.s32.totalorder %s38_s12, %s38_s12 }
   0xe   :  { %p426_p3 = scmp.ne.s32.totalorder %s38_s12, %s425_s21  ;;  %p431_p5 = scmp.lt.s32.totalorder %s425_s21, %s425_s21 }
  0x10   :  { %p432_p6 = por %p431_p5, %p430_p4 }
  0x12   :  { %p433_p7 = pnand %p432_p6, %p426_p3 }
  0x14   :  { %436 = shalt.err (!%p433_p7)
}
  0x15   :  { %40 = dma.hbm_to_vmem [thread:$0]  %s644_s2, 128, %s38_s12, [#allocation7]  }
  0x16   :  { %s437_s26 = scalar_lea.hbm %s642_s0, 128 }
  0x17   :  { %p438_p8 = scmp.ne.s32.totalorder %s642_s0, %s437_s26  ;;  %p441_p9 = scmp.lt.u32.totalorder %s437_s26, %s642_s0 }
  0x19   :  { %p443_p10 = pnand %p441_p9, %p438_p8 }
  0x1b   :  { %446 = shalt.err (!%p443_p10)
}
  0x1c   :  { %s447_s10 = scalar_lea.vmem %s26_s14, 128  ;;  %p452_p12 = scmp.lt.s32.totalorder %s26_s14, %s26_s14 }
  0x1d   :  { %p448_p11 = scmp.ne.s32.totalorder %s26_s14, %s447_s10  ;;  %p453_p13 = scmp.lt.s32.totalorder %s447_s10, %s447_s10 }
  0x1f   :  { %p454_p0 = por %p453_p13, %p452_p12 }
  0x21   :  { %p455_p1 = pnand %p454_p0, %p448_p11 }
  0x23   :  { %458 = shalt.err (!%p455_p1)
}
  0x24   :  { %28 = dma.hbm_to_vmem [thread:$0]  %s642_s0, 128, %s26_s14, [#allocation4]  }
  0x25   :  { %s511_s12 = smov [#allocation8]   ;;  %s459_s17 = scalar_lea.hbm %s645_s3, 64 }
  0x26   :  { %s47_s13 = sshll.u32 %s511_s12, 4  ;;  %p460_p2 = scmp.ne.s32.totalorder %s645_s3, %s459_s17  ;;  %s48_s13 = int_to_ptr.vmem [resolvable:$true] %s47_s13 }
  0x27   :  { %p463_p3 = scmp.lt.u32.totalorder %s459_s17, %s645_s3 }
  0x29   :  { %p465_p4 = pnand %p463_p3, %p460_p2 }
  0x2b   :  { %468 = shalt.err (!%p465_p4)
}
  0x2c   :  { %s469_s21 = scalar_lea.vmem %s48_s13, 64  ;;  %p474_p6 = scmp.lt.s32.totalorder %s48_s13, %s48_s13 }
  0x2d   :  { %p470_p5 = scmp.ne.s32.totalorder %s48_s13, %s469_s21  ;;  %p475_p7 = scmp.lt.s32.totalorder %s469_s21, %s469_s21 }
  0x2f   :  { %p476_p8 = por %p475_p7, %p474_p6 }
  0x31   :  { %p477_p9 = pnand %p476_p8, %p470_p5 }
  0x33   :  { %480 = shalt.err (!%p477_p9)
}
  0x34   :  { %50 = dma.hbm_to_vmem [thread:$0]  %s645_s3, 64, %s48_s13, [#allocation7]  }
  0x35   :  { %503 = dma.done.wait [#allocation4], 128  }
  0x36   :  { %504 = vsyncadd [#allocation4], 4294967168 }
  0x37   :  { %505 = dma.done.wait [#allocation7], 192  }
  0x38   :  { %506 = vsyncadd [#allocation7], 4294967104  ;;  %v512_v1 = vmov 0.0   ;;  %vm513_vm0 = vmmov 0   ;;  %vm78_vm1 = vcmask 1043456   ;;  %vm74_vm2 = vcmask 31744  }
  0x39   :  { %379 = vmatprep.subr.mxu1 %v512_v1  ;;  %381 = vmatprep.mubr.msk.f32.mxu1 %vm513_vm0, %v512_v1  ;;  %v73_v2 = vld [vmem:[#allocation8] sm:$0xf]  ;;  %v72_v3 = vld [vmem:[%s643_s1] sm:$0xff]  ;;  %v71_v4 = vld [vmem:[#allocation6] sm:$0xff]  ;;  %vm152_vm3 = vcmask 64512   ;;  %v514_v8 = vmov 0.0|0.0  }
  0x3a   :  { %397 = vmatprep.mubr.msk.f32.mxu0 %vm513_vm0, %v512_v1  ;;  %380 = vmatpush3.msk.msra.mxu1 %vm78_vm1, %v73_v2  ;;  %v70_v5 = vld [vmem:[#allocation3] sm:$0xff]  ;;  %v237_v10 = vld [vmem:[%s647_s5 + $0x10] sm:$0xff]  ;;  %v238_v11 = vld [vmem:[%s647_s5 + $0x18] sm:$0xff]  ;;  %vm246_vm4 = vcmask 261120   ;;  %v515_v29 = vmov 0  }
  0x3b   :  { %382 = vmatmul.mubr.msk.f32.vlgmr.msra.gmra.mrb[0].mxu1 %vm74_vm2, %v72_v3  ;;  %384 = vmatprep.subr.mxu1 %v512_v1  ;;  %v235_v6 = vld [vmem:[%s647_s5] sm:$0xff]  ;;  %v236_v7 = vld [vmem:[%s647_s5 + $0x8] sm:$0xff]  ;;  %v404_v12 = vpack.c.bf16 %v238_v11, %v237_v10 }
  0x3c   :  { %385 = vmatpush3.msra.mxu1 %v71_v4  ;;  %386 = vmatprep.mubr.msk.f32.mxu1 %vm513_vm0, %v512_v1  ;;  %v401_v9 = vpack.c.bf16 %v236_v7, %v235_v6  ;;  %v365_v16 = vld [vmem:[%s646_s4] ss:$0 sm:$0xff]  ;;  %s516_s4 = smov [#allocation9]  }
  0x3d   :  { %400 = vmatprep.subr.bf16.mxu0 %v514_v8  ;;  %v366_v21 = vld [vmem:[%s648_s6] ss:$0 sm:$0xff]  ;;  %414 = vset.pattern.permute.xlu0 %v515_v29  ;;  %s352_s13 = sshll.u32 %s516_s4, 4  ;;  %s353_s13 = int_to_ptr.vmem [resolvable:$true] %s352_s13 }
  0x3e   :  { %402 = vmatpush3.bf16.msra.mxu0 %v401_v9  ;;  %v368_v25 = vld [vmem:[%s649_s7] ss:$0 sm:$0xff]  ;;  %s481_s6 = scalar_lea.vmem %s353_s13, 128  ;;  %p486_p11 = scmp.lt.s32.totalorder %s353_s13, %s353_s13 }
  0x3f   :  { %387 = vmatmul.mubr.msk.f32.vlgmr.msra.gmra.mrb[2].mxu1 %vm152_vm3, %v70_v5  ;;  %403 = vmatprep.subr.bf16.mxu0 %v514_v8  ;;  %v369_v30 = vld [vmem:[#allocation2] ss:$0 sm:$0xff]  ;;  %p482_p10 = scmp.ne.s32.totalorder %s353_s13, %s481_s6  ;;  %p487_p12 = scmp.lt.s32.totalorder %s481_s6, %s481_s6 }
  0x41   :  { %p488_p13 = por %p487_p12, %p486_p11 }
  0x42   :  { %405 = vmatpush3.bf16.msra.mxu0 %v404_v12 }
  0x43   :  { %p489_p0 = pnand %p488_p13, %p482_p10 }
 0x10e   :  { %v148_v13 = vpop.f32.mrb[0].mxu1 }
 0x10f   :  { %v383_v14 = vpop.f32.mrb[1].mxu1 }
 0x112   :  { %v222_v15 = vpop.f32.mrb[2].mxu1 }
 0x113   :  { %v223_v17 = vadd.f32 %v222_v15, %v148_v13  ;;  %v388_v18 = vpop.f32.mrb[3].mxu1 }
 0x115   :  { %v233_v19 = vadd.f32 %v365_v16, %v223_v17 }
 0x117   :  { %v234_v20 = vmax.f32 %v233_v19, 0.0 }
 0x119   :  { %398 = vmatmul.mubr.msk.f32.vlgmr.msra.gmra.mrb[0].mxu0 %vm246_vm4, %v234_v20 }
 0x1ec   :  { %v316_v22 = vpop.f32.mrb[0].mxu0 }
 0x1ed   :  { %v317_v23 = vadd.f32 %v366_v21, %v316_v22  ;;  %v399_v24 = vpop.f32.mrb[1].mxu0 }
 0x1ef   :  { %v320_v26 = vmax.f32 %v317_v23, 0.0 }
 0x1f1   :  { %v328_v27 = vmul.f32 %v368_v25, %v320_v26 }
 0x1f3   :  { %v329_v28 = vsel %vm246_vm4, %v328_v27, 0.0 }
 0x1f4   :  { %330 = vadd.xlane.f32.xlu0 %v329_v28 }
 0x281   :  { %v331_v31 = vpop.xlane.xlu0 %330 }
 0x282   :  { %v339_v32 = vadd.f32 %v369_v30, %v331_v31 }
 0x284   :  { %342 = vperm.xlu0 %414, %v339_v32  }
 0x303   :  { %v343_v33 = vpop.permute.xlu0 %342 }
 0x304   :  { %345 = vst [vmem:[#allocation9] sm:$0xff] %v343_v33 }
 0x305   :  { %492 = shalt.err (!%p489_p0)
}
 0x306   :  { %s493_s16 = scalar_lea.hbm %s651_s9, 128 }
 0x307   :  { %p494_p1 = scmp.ne.s32.totalorder %s651_s9, %s493_s16  ;;  %p497_p2 = scmp.lt.u32.totalorder %s493_s16, %s651_s9 }
 0x309   :  { %p499_p3 = pnand %p497_p2, %p494_p1 }
 0x30b   :  { %502 = shalt.err (!%p499_p3)
}
 0x30c   :  { %355 = dma.vmem_to_hbm [thread:$0]  %s353_s13, 128, %s651_s9, [#allocation5]  }
 0x30d   :  { %507 = dma.done.wait [#allocation5], 128  }
 0x30e   :  { %508 = vsyncadd [#allocation5], 4294967168 }
 0x30f   :  { %359 = vsyncpa [#allocation4], 1 }
 0x310   :  { %360 = vsyncpa [#allocation7], 1 }
 0x311   :  { %361 = vsyncpa [#allocation5], 1 }

</bundles_post_ra>
